<compile_context>
chip_gen: v5e
topology: v5e:2x2
jax: 0.10.0
libtpu: 0.0.40
codegen_flags: <defaults>
</compile_context>

<pallas_src>
from functools import partial

import jax
import jax.numpy as jnp
from jax.experimental import pallas as pl
from jax.experimental.pallas import tpu as pltpu


# ---------------------------------------------------------------------------
# Tile selection
# ---------------------------------------------------------------------------

_TARGET_BLOCK_BYTES = 4 * 1024 * 1024    # ~4 MiB x tile -> near HBM roofline, ~24 MiB VMEM total
_VMEM_LIMIT_BYTES = 48 * 1024 * 1024     # above the default scoped limit, below v7x physical (64 MiB)


def _pick_divisor_tile(n, max_t, align):
    """Largest divisor of n that is <= max_t and a multiple of `align`.
    Returns n itself (full dim, always legal) if n <= max_t or no aligned divisor exists."""
    if n <= max_t:
        return n
    t = (max_t // align) * align
    while t >= align:
        if n % t == 0:
            return t
        t -= align
    # TODO(synk): no (8,128)-aligned divisor <= budget (pathological prime-sized axis);
    # fall back to the full dimension (legal, may exceed the VMEM target).
    return n


def _choose_tiles(R, C, itemsize):
    """Pick (TR, TC) such that TR*TC*itemsize ~ _TARGET_BLOCK_BYTES, TC lane-aligned,
    TR sublane-aligned (or full dims)."""
    max_elems = max(1, _TARGET_BLOCK_BYTES // itemsize)
    # leave room for >= 8 sublanes in the row tile when the row axis allows it
    tc_budget = max(128, max_elems // 8) if R >= 8 else max_elems
    tc = _pick_divisor_tile(C, tc_budget, 128)
    tr = _pick_divisor_tile(R, max(1, max_elems // tc), 8)
    return tr, tc


# ---------------------------------------------------------------------------
# Pallas kernel + call
# ---------------------------------------------------------------------------

def _add_pos_kernel(x_ref, e_ref, o_ref):
    # x: (1, TR, TC) tile for one batch element; e: (TR, TC) positional slab.
    o_ref[0] = x_ref[0] + e_ref[...]


def _broadcast_add_call(x3, e2, tr, tc):
    """out[b] = x3[b] + e2 for x3: (B, R, C), e2: (R, C)."""
    B, R, C = x3.shape
    itemsize = jnp.dtype(x3.dtype).itemsize
    grid = (R // tr, C // tc, B)          # batch innermost -> each e tile DMA'd once, reused over B
    cost = pl.CostEstimate(
        flops=int(B * R * C),
        transcendentals=0,
        bytes_accessed=int((2 * B * R * C + R * C) * itemsize),
    )
    return pl.pallas_call(
        _add_pos_kernel,
        out_shape=jax.ShapeDtypeStruct((B, R, C), x3.dtype),
        grid=grid,
        in_specs=[
            pl.BlockSpec((1, tr, tc), lambda r, c, b: (b, r, c)),
            pl.BlockSpec((tr, tc), lambda r, c, b: (r, c)),
        ],
        out_specs=pl.BlockSpec((1, tr, tc), lambda r, c, b: (b, r, c)),
        compiler_params=pltpu.CompilerParams(
            dimension_semantics=("parallel", "parallel", "arbitrary"),
            vmem_limit_bytes=_VMEM_LIMIT_BYTES,
        ),
        cost_estimate=cost,
    )(x3, e2)


@partial(jax.jit, static_argnames=("tr", "tc"))
def _forward_3d(x, e, *, tr, tc):
    # x: (B, L, hidden), e: (L, hidden)
    return _broadcast_add_call(x, e, tr, tc)


@partial(jax.jit, static_argnames=("tr", "tc"))
def _forward_4d(x, e, *, tr, tc):
    # x: (B, H, L, D), e: (H, L*D) per-head slab.  Reshapes are on contiguous dims (free).
    B, H, L, D = x.shape
    y = _broadcast_add_call(x.reshape(B, H, L * D), e, tr, tc)
    return y.reshape(B, H, L, D)


# ---------------------------------------------------------------------------
# Module
# ---------------------------------------------------------------------------

class LearnableAbsolutePositionEmbedding:
    """JAX/Pallas port of the PyTorch module (forward pass only)."""

    def __init__(self, max_position_embeddings, hidden_size, key):
        self.max_position_embeddings = max_position_embeddings
        self.hidden_size = hidden_size
        # nn.Embedding default init: weight ~ N(0, 1)
        self.embeddings = jax.random.normal(
            key, (max_position_embeddings, hidden_size), jnp.float32)
        self.position_ids = jnp.arange(max_position_embeddings)        # kept for parity
        self._slab_cache = {}                                          # hoisted e preparation

    # -- cached positional slabs (computed once per shape/dtype, not per forward) --------
    def _slab_3d(self, L, dtype):
        key = ("3d", L, jnp.dtype(dtype).name)
        if key not in self._slab_cache:
            self._slab_cache[key] = self.embeddings[:L].astype(dtype)              # (L, hidden)
        return self._slab_cache[key]

    def _slab_4d(self, L, H, dtype):
        key = ("4d", L, H, jnp.dtype(dtype).name)
        if key not in self._slab_cache:
            D = self.hidden_size // H
            e = self.embeddings[:L].reshape(L, H, D).transpose(1, 0, 2)            # (H, L, D)
            self._slab_cache[key] = e.reshape(H, L * D).astype(dtype)              # (H, L*D)
        return self._slab_cache[key]

    def __call__(self, x):
        L = x.shape[-2]
        if L > self.max_position_embeddings:
            raise ValueError(
                f"sequence length {L} exceeds max_position_embeddings "
                f"{self.max_position_embeddings}")
        itemsize = jnp.dtype(x.dtype).itemsize
        if x.ndim == 3:
            assert x.shape[-1] == self.hidden_size, "last dim must equal hidden_size"
            e = self._slab_3d(L, x.dtype)
            tr, tc = _choose_tiles(L, self.hidden_size, itemsize)
            return _forward_3d(x, e, tr=tr, tc=tc)
        elif x.ndim == 4:
            B, H, _, D = x.shape
            assert H * D == self.hidden_size, "hidden_size must equal h*d for 4-D inputs"
            e = self._slab_4d(L, H, x.dtype)
            tr, tc = _choose_tiles(H, L * D, itemsize)
            return _forward_4d(x, e, tr=tr, tc=tc)
        raise ValueError("expected a 3-D (b,l,d) or 4-D (b,h,l,d) input")


# ---------------------------------------------------------------------------
# Pure-JAX reference (mirrors the PyTorch forward) for verification
# ---------------------------------------------------------------------------

def _reference(x, emb_table):
    L = x.shape[-2]
    e = emb_table[:L].astype(x.dtype)
    if x.ndim == 3:
        return x + e[None, :, :]
    B, H, _, D = x.shape
    y = x.transpose(0, 2, 1, 3).reshape(B, L, H * D)     # b h l d -> b l (h d)
    y = y + e[None, :, :]
    return y.reshape(B, L, H, D).transpose(0, 2, 1, 3)   # b l (h d) -> b h l d


# ---------------------------------------------------------------------------
# Main
# ---------------------------------------------------------------------------

if __name__ == "__main__":
    key = jax.random.PRNGKey(0)
    k_emb, k_x3, k_x4, k_xb, k_et, k_xt = jax.random.split(key, 6)

    max_position_embeddings = 16
    hidden_size = 32
    module = LearnableAbsolutePositionEmbedding(max_position_embeddings, hidden_size, k_emb)

    # 3-D path: (batch=2, seq=8, hidden=32)
    x3 = jax.random.normal(k_x3, (2, 8, hidden_size), jnp.float32)
    y3 = module(x3)
    jax.block_until_ready(y3)
    assert y3.shape == x3.shape
    assert bool(jnp.allclose(y3, _reference(x3, module.embeddings), atol=1e-6, rtol=1e-6))

    # 4-D path: (batch=2, heads=4, seq=8, head_dim=8) -> h*d = hidden_size = 32
    x4 = jax.random.normal(k_x4, (2, 4, 8, 8), jnp.float32)
    y4 = module(x4)
    jax.block_until_ready(y4)
    assert y4.shape == x4.shape
    assert bool(jnp.allclose(y4, _reference(x4, module.embeddings), atol=1e-6, rtol=1e-6))

    # bf16 streaming path (table cast to the input dtype inside the module)
    x3b = x3.astype(jnp.bfloat16)
    y3b = module(x3b)
    jax.block_until_ready(y3b)
    refb = x3b + module.embeddings[:8].astype(jnp.bfloat16)[None]
    assert y3b.dtype == jnp.bfloat16
    assert bool(jnp.allclose(y3b.astype(jnp.float32), refb.astype(jnp.float32), atol=1e-2))

    # Multi-tile path: force (TR, TC) = (8, 128) on a (2, 16, 256) input -> grid (2, 2, 2),
    # exercising the tiled BlockSpecs and the e-tile reuse across the inner batch axis.
    e_t = jax.random.normal(k_et, (16, 256), jnp.float32)
    x_t = jax.random.normal(k_xt, (2, 16, 256), jnp.float32)
    y_t = _forward_3d(x_t, e_t, tr=8, tc=128)
    jax.block_until_ready(y_t)
    assert bool(jnp.allclose(y_t, x_t + e_t[None], atol=1e-6, rtol=1e-6))

    assert bool(jnp.all(jnp.isfinite(y3))) and bool(jnp.all(jnp.isfinite(y4)))
    print("KERNEL_OK")
</pallas_src>

<mosaic_0001>
module attributes {stable_mosaic.version = 11 : i64} {
  func.func @_add_pos_kernel(%arg0: i32, %arg1: i32, %arg2: i32, %arg3: memref<1x8x32xf32, #tpu.memory_space<vmem>>, %arg4: memref<8x32xf32, #tpu.memory_space<vmem>>, %arg5: memref<1x8x32xf32, #tpu.memory_space<vmem>>) attributes {dimension_semantics = [#tpu.dimension_semantics<parallel>, #tpu.dimension_semantics<parallel>, #tpu.dimension_semantics<arbitrary>], iteration_bounds = array<i64: 1, 1, 2>, scalar_prefetch = 0 : i64, scratch_operands = 0 : i64, tpu.core_type = #tpu.core_type<tc>, window_params = [{transform_indices = @transform_0, window_bounds = array<i64: 1, 8, 32>}, {transform_indices = @transform_1, window_bounds = array<i64: 8, 32>}, {transform_indices = @transform_2, window_bounds = array<i64: 1, 8, 32>}]} {
    %c0 = arith.constant 0 : index
    %c0_0 = arith.constant 0 : index
    %c0_1 = arith.constant 0 : index
    %0 = vector.load %arg3[%c0, %c0_0, %c0_1] : memref<1x8x32xf32, #tpu.memory_space<vmem>>, vector<1x8x32xf32>
    %1 = vector.shape_cast %0 : vector<1x8x32xf32> to vector<8x32xf32>
    %c0_2 = arith.constant 0 : index
    %c0_3 = arith.constant 0 : index
    %2 = vector.load %arg4[%c0_2, %c0_3] : memref<8x32xf32, #tpu.memory_space<vmem>>, vector<8x32xf32>
    %3 = arith.addf %1, %2 : vector<8x32xf32>
    %c0_4 = arith.constant 0 : index
    %c0_5 = arith.constant 0 : index
    %c0_6 = arith.constant 0 : index
    %4 = vector.load %arg5[%c0_4, %c0_5, %c0_6] : memref<1x8x32xf32, #tpu.memory_space<vmem>>, vector<1x8x32xf32>
    %5 = vector.shape_cast %4 : vector<1x8x32xf32> to vector<8x32xf32>
    %6 = vector.shape_cast %3 : vector<8x32xf32> to vector<1x8x32xf32>
    tpu.vector_store %arg5[%c0_4, %c0_5, %c0_6], %6 {strides = array<i32>} : memref<1x8x32xf32, #tpu.memory_space<vmem>>, vector<1x8x32xf32>,
    return
  }
  func.func @transform_0(%arg0: i32, %arg1: i32, %arg2: i32) -> (i32, i32, i32) {
    %c0_i32 = arith.constant 0 : i32
    return %arg2, %arg0, %arg1 : i32, i32, i32
  }
  func.func @transform_1(%arg0: i32, %arg1: i32, %arg2: i32) -> (i32, i32) {
    %c0_i32 = arith.constant 0 : i32
    return %arg0, %arg1 : i32, i32
  }
  func.func @transform_2(%arg0: i32, %arg1: i32, %arg2: i32) -> (i32, i32, i32) {
    %c0_i32 = arith.constant 0 : i32
    return %arg2, %arg0, %arg1 : i32, i32, i32
  }
}

</mosaic_0001>

<bundles_post_ra>
// kernel: _forward_3d.1
= control target key start
LH: loop header
LB: loop body
LE: loop exit
PB: predicated region body
PF: predicated region fallthrough
CT: control target
= control target key end

     0   :  { %7 = vsyncpa [#allocation3], 0  ;;  %s737_s0 = inlined_call_operand.hbm [shape: f32[2,8,32], index: 0, kind: input, shape index: {}]   ;;  %s738_s1 = inlined_call_operand.hbm [shape: f32[8,32], index: 1, kind: input, shape index: {}]   ;;  %s739_s2 = inlined_call_operand.hbm [shape: f32[2,8,32], index: 2, kind: output, shape index: {}]  }
   0x1   :  { %9 = vsyncpa [#allocation3 + $0x1], 0 }
   0x2   :  { %10 = vsyncpa [#allocation6], 0 }
   0x3   :  { %11 = vsyncpa [#allocation4], 0 }
   0x4   :  { %13 = vsyncpa [#allocation4 + $0x1], 0  ;;  %s588_s9 = smov 0   ;;  %s590_s10 = smov 0  }
   0x5   :  { %s592_s11 = smov 0   ;;  %s594_s12 = smov 0  }
   0x6   :  { %s596_s13 = smov 0   ;;  %s598_s14 = smov 0  }
   0x7 LB: > { %s336_s15 = sadd.s32 4294967295, %s570_s14   ;;  %s337_s16 = sadd.s32 4294967294, %s570_s14   ;;  %s570_s14 = sphi %s598_s14, %s19_s14   ;;  %s566_s13 = sphi %s596_s13, %s751_s13   ;;  %s562_s12 = sphi %s594_s12, %s750_s12   ;;  %s558_s11 = sphi %s592_s11, %s749_s11   ;;  %s554_s10 = sphi %s590_s10, %s748_s10   ;;  %s550_s9 = sphi %s588_s9, %s747_s9  }
   0x8   : > { %p62_p0 = scmp.ne.s32.totalorder %s554_s10, %s550_s9  ;;  %p622_p1 = scmp.eq.s32.totalorder %s336_s15, 0 }
   0x9   : > { %p626_p2 = scmp.eq.s32.totalorder %s336_s15, 1  ;;  %p124_p3 = scmp.eq.s32.totalorder %s337_s16, 1 }
   0xa   : > { %p632_p4 = por %p622_p1, %p62_p0  ;;  %p338_p5 = scmp.ge.s32.totalorder %s570_s14, 1 }
   0xb   : > { %p637_p6 = por %p124_p3, %p62_p0  ;;  %p131_p7 = scmp.lt.s32.totalorder %s570_s14, 3 }
   0xc   : > { %s146_s23 = sshll.u32 %s738_s1, 4  ;;  %p340_p9 = scmp.ge.s32.totalorder %s570_s14, 2  ;;  %s147_s23 = int_to_ptr.hbm [resolvable:$true] %s146_s23 }
   0xd   : > { %p645_p8 = pnand %p338_p5, %p131_p7  ;;  %s572_s25 = smov [#allocation5]  }
   0xe   : > { %s148_s26 = sshll.u32 %s572_s25, 4  ;;  %s31_s27 = sadd.s32 1, %s566_s13  ;;  %s149_s26 = int_to_ptr.vmem [resolvable:$true] %s148_s26 }
   0xf   : > { %p359_p10 = pneg %p645_p8  ;;  %p32_p12 = scmp.ge.s32.totalorder %s31_s27, 2 }
  0x10   : > { %s49_s28 = sadd.s32 1, %s558_s11  ;;  %p56_p13 = scmp.ne.s32.totalorder %s558_s11, %s554_s10 }
  0x11   : > { %p360_p11 = pnand %p359_p10, %p622_p1  ;;  %p57_p0 = scmp.eq.s32.totalorder %s570_s14, 0 }
  0x12   : > { %s753_s27 = smov (%p32_p12, %s31_s27), 0  ;;  %p667_p5 = por %p626_p2, %p56_p13 }
  0x13   : > { %362 = dma.hbm_to_vmem [thread:$0]  (!%p360_p11), %s147_s23, 128, %s149_s26, [#allocation6]  }
  0x14   : > { %p661_p3 = por %p57_p0, %p56_p13  ;;  %s42_s3 = ssub.s32 %s566_s13, %s753_s27 }
  0x15   : > { %p372_p7 = scmp.lt.s32.totalorder %s570_s14, 2  ;;  %p47_p10 = scmp.eq.s32.totalorder %s42_s3, 0 }
  0x16   : > { %s159_s4 = sand.u32 1, %s558_s11   ;;  %s342_s7 = sshll.u32 %s566_s13, 3 }
  0x17   : > { %s341_s5 = sshll.u32 %s159_s4, 3  ;;  %s169_s16 = scalar_lea.hbm %s737_s0, %s342_s7 }
  0x18   : > { %s676_s6 = scalar_select %p47_p10, %s558_s11, %s49_s28  }
  0x19   : > { %s163_s21 = scalar_lea.vmem [#allocation2], %s341_s5  ;;  %s171_s18 = sshll.u32 %s169_s16, 4  ;;  %s172_s18 = int_to_ptr.hbm [resolvable:$true] %s171_s18 }
  0x1a   : > { %s173_s22 = sshll.u32 %s163_s21, 4  ;;  %p364_p2 = pnand %p372_p7, %p661_p3  ;;  %s174_s22 = int_to_ptr.vmem [resolvable:$true] %s173_s22 }
  0x1b   : > { %s160_s23 = scalar_lea.sflag [#allocation3], %s159_s4  ;;  %182 = sbr.rel (%p645_p8) target bundleno = 50 (0x32), region = 28 }
  0x1c   : > { %366 = dma.hbm_to_vmem [thread:$0]  (!%p364_p2), %s172_s18, 128, %s174_s22, %s160_s23  }
  0x1d   : > { %s687_s25 = sand.u32 (!%p645_p8), 1, %s554_s10  }
  0x1e   : > { %s344_s26 = sshll.u32 (!%p645_p8), %s687_s25, 3  ;;  %s185_s28 = scalar_lea.sflag (!%p645_p8), [#allocation3], %s687_s25 }
  0x1f   : > { %s188_s3 = scalar_lea.vmem (!%p645_p8), [#allocation2], %s344_s26 }
  0x20   : > { %537 = dma.done.wait (%p632_p4), %s185_s28, 128  }
  0x21   : > { %539 = vsyncadd (%p632_p4), %s185_s28, 4294967168 }
  0x22   : > { %541 = dma.done.wait (%p622_p1), [#allocation6], 128  }
  0x23   : > { %543 = vsyncadd (%p622_p1), [#allocation6], 4294967168  ;;  %s348_s24 = sshll.u32 %s562_s12, 3  ;;  %s214_s7 = scalar_lea.vmem [#allocation7], %s344_s26  ;;  %v215_v0 = vld [vmem:[%s188_s3] sm:$0xff]  ;;  %v216_v1 = vld [vmem:[#allocation5] sm:$0xff] }
  0x24   : > { %s233_s5 = scalar_lea.hbm %s739_s2, %s348_s24  ;;  %s235_s8 = sshll.u32 %s214_s7, 4  ;;  %vm218_vm0 = vcmask 261120   ;;  %v217_v2 = vadd.f32 %v216_v1, %v215_v0  ;;  %s236_s8 = int_to_ptr.vmem [resolvable:$true] %s235_s8 }
  0x25   : > { %s237_s15 = sshll.u32 %s233_s5, 4  ;;  %s221_s17 = scalar_lea.sflag [#allocation4], %s687_s25  ;;  %s238_s15 = int_to_ptr.hbm [resolvable:$true] %s237_s15 }
  0x26   : > { %219 = vst.msk [vmem:[%s214_s7] sm:$0xff] %vm218_vm0, %v217_v2  ;;  %s498_s19 = sshra.s32 %s238_s15, 4  ;;  %s504_s22 = scalar_lea.hbm %s739_s2, 16  ;;  %s499_s19 = int_to_ptr.hbm [resolvable:$true] %s498_s19 }
  0x27   : > { %s500_s16 = scalar_lea.hbm %s499_s19, 8  ;;  %p505_p11 = scmp.lt.s32.totalorder %s499_s19, %s739_s2 }
  0x28   : > { %p501_p1 = scmp.ne.s32.totalorder %s499_s19, %s500_s16  ;;  %p506_p12 = scmp.lt.s32.totalorder %s504_s22, %s500_s16 }
  0x2a   : > { %p502_p4 = pnand %p501_p1, %p667_p5  ;;  %p507_p13 = por %p506_p12, %p505_p11 }
  0x2c   : > { %p503_p8 = pneg %p502_p4 }
  0x2e   : > { %p508_p0 = pnand %p507_p13, %p503_p8 }
  0x30   : > { %511 = shalt.err (!%p508_p0)
}
  0x31   : > { %357 = dma.vmem_to_hbm [thread:$0]  (%p667_p5), %s236_s8, 128, %s238_s15, %s221_s17  }
  0x32 PF: > { %s249_s25 = sand.u32 1, %s550_s9   ;;  %p368_p3 = pnand %p340_p9, %p637_p6 }
  0x33   : > { %s250_s26 = scalar_lea.sflag [#allocation4], %s249_s25 }
  0x34   : > { %p369_p7 = pneg %p368_p3 }
  0x36   : > { %545 = dma.done.wait (%p369_p7), %s250_s26, 128  }
  0x37   : > { %547 = vsyncadd (%p369_p7), %s250_s26, 4294967168  ;;  %s19_s14 = sadd.s32 1, %s570_s14   ;;  %s747_s9 = smov %s554_s10 }
  0x38   : > { %p16_p10 = scmp.ge.s32.totalorder %s19_s14, 4   ;;  %s748_s10 = smov %s558_s11 }
  0x39   : > { %s749_s11 = smov %s676_s6  ;;  %s750_s12 = smov %s566_s13 }
  0x3a   : > { %s751_s13 = smov %s753_s27  ;;  %18 = sbr.rel (!%p16_p10) target bundleno = 7 (0x7), region = 78 }
  0x3f   :  { %256 = vsyncpa [#allocation3], 1 }
  0x40   :  { %258 = vsyncpa [#allocation3 + $0x1], 1 }
  0x41   :  { %259 = vsyncpa [#allocation6], 1 }
  0x42   :  { %260 = vsyncpa [#allocation4], 1 }
  0x43   :  { %262 = vsyncpa [#allocation4 + $0x1], 1 }

</bundles_post_ra>
